<compile_context>
chip_gen: v7x
topology: tpu7x:2x2x1
jax: 0.10.0
libtpu: 0.0.40
codegen_flags: <defaults>
</compile_context>

<pallas_src>
import jax
import jax.numpy as jnp
from jax.experimental import pallas as pl
from jax.experimental.pallas import tpu as pltpu


SUBLANE = 16                    # batch-tile granularity (safe for f32 & bf16 rows)
MAX_TB = 1024                   # max batch rows per grid step
COMPUTE_DTYPE = jnp.bfloat16    # MXU operand dtype (accumulation stays f32)


def _round_up(x, m):
    return (x + m - 1) // m * m


# --------------------------------------------------------------------------
# Pallas kernel: fused Linear->ReLU->Linear->ReLU->Linear on one batch tile
# --------------------------------------------------------------------------
def fcca_kernel(x_ref, w0_ref, b0_ref, w1_ref, b1_ref, w2_ref, b2_ref, o_ref):
    # In-kernel bf16 cast of the MXU operands (x and weights); f32 elsewhere.
    x = x_ref[...].astype(COMPUTE_DTYPE)                               # (TB, in)

    # input_layer + ReLU (f32 accumulate, f32 elementwise)
    h = jnp.dot(x, w0_ref[...].astype(COMPUTE_DTYPE),
                preferred_element_type=jnp.float32) + b0_ref[...]
    h = jnp.maximum(h, 0.0).astype(COMPUTE_DTYPE)

    # hidden_layers[0] + ReLU
    h = jnp.dot(h, w1_ref[...].astype(COMPUTE_DTYPE),
                preferred_element_type=jnp.float32) + b1_ref[...]
    h = jnp.maximum(h, 0.0).astype(COMPUTE_DTYPE)

    # output_layer (no activation). Output block spans the full last dim, so
    # this is a contiguous (masked) store of exactly out_dim lanes per row.
    o_ref[...] = (
        jnp.dot(h, w2_ref[...].astype(COMPUTE_DTYPE),
                preferred_element_type=jnp.float32) + b2_ref[...]
    ).astype(o_ref.dtype)


# --------------------------------------------------------------------------
# Wrapper: batch tiling, grid setup (no padding, no post-kernel slice)
# --------------------------------------------------------------------------
@jax.jit
def fcca_forward(x, w0, b0, w1, b1, w2, b2):
    """Fused FCCA MLP forward. x: (B, input_dim) or (input_dim,). Returns (B, output_dim) f32."""
    # _format: promote a single state vector to a batch of one.
    if x.ndim == 1:
        x = x[None, :]
    x = x.astype(jnp.float32)

    B, in_dim = x.shape
    h0 = w0.shape[1]
    h1 = w1.shape[1]
    out_dim = w2.shape[1]

    # Batch tile: for small B take the whole batch in one block; for moderate B
    # split into (at least) two grid steps so v7x's two TensorCores both engage.
    if B <= 8:
        tb = B                                   # block == full batch dim (legal)
    elif B <= SUBLANE:
        tb = _round_up(B, 8)
    else:
        tb = min(MAX_TB, _round_up((B + 1) // 2, SUBLANE))
    grid = (pl.cdiv(B, tb),)

    # VMEM budget from actual buffer sizes (double-buffered x/out tiles +
    # resident weights/biases), with 2x headroom.
    vmem_bytes = (
        2 * tb * in_dim * 4                                   # x tiles (f32)
        + 2 * tb * out_dim * 4                                # out tiles (f32)
        + (in_dim * h0 + h0 * h1 + h1 * out_dim) * 4 * 2      # weights (f32 + bf16 copies)
        + (h0 + h1 + out_dim) * 4 * 2                         # biases
        + tb * max(h0, h1) * 4 * 2                            # activations
    )
    vmem_limit = int(min(64 * 1024 * 1024, max(4 * 1024 * 1024, 2 * vmem_bytes)))

    cost = pl.CostEstimate(
        flops=2 * B * (in_dim * h0 + h0 * h1 + h1 * out_dim),
        transcendentals=0,
        bytes_accessed=(
            B * in_dim * 4                                    # read x
            + (in_dim * h0 + h0 * h1 + h1 * out_dim) * 4      # read weights
            + (h0 + h1 + out_dim) * 4                         # read biases
            + B * out_dim * 4                                 # write logits
        ),
    )

    out = pl.pallas_call(
        fcca_kernel,
        out_shape=jax.ShapeDtypeStruct((B, out_dim), jnp.float32),
        grid=grid,
        in_specs=[
            pl.BlockSpec((tb, in_dim), lambda i: (i, 0)),     # x: tiled over batch
            pl.BlockSpec((in_dim, h0), lambda i: (0, 0)),     # w0: resident
            pl.BlockSpec((1, h0), lambda i: (0, 0)),          # b0: resident
            pl.BlockSpec((h0, h1), lambda i: (0, 0)),         # w1: resident
            pl.BlockSpec((1, h1), lambda i: (0, 0)),          # b1: resident
            pl.BlockSpec((h1, out_dim), lambda i: (0, 0)),    # w2: resident
            pl.BlockSpec((1, out_dim), lambda i: (0, 0)),     # b2: resident
        ],
        out_specs=pl.BlockSpec((tb, out_dim), lambda i: (i, 0)),
        compiler_params=pltpu.CompilerParams(
            dimension_semantics=("parallel",),                # v7x: split across 2 TCs
            vmem_limit_bytes=vmem_limit,
        ),
        cost_estimate=cost,
    )(x, w0, b0, w1, b1, w2, b2)

    return out


# --------------------------------------------------------------------------
# Deterministic parameter init (mirrors orthogonal_init in the PyTorch code)
# --------------------------------------------------------------------------
def orthogonal_weight(key, out_dim, in_dim, gain=1.0):
    """Orthogonal init a la nn.init.orthogonal_ for a (out_dim, in_dim) weight."""
    rows, cols = out_dim, in_dim
    flat = jax.random.normal(key, (rows, cols), dtype=jnp.float32)
    if rows < cols:
        flat = flat.T
    q, r = jnp.linalg.qr(flat)
    d = jnp.sign(jnp.diagonal(r))
    q = q * d[None, :]
    if rows < cols:
        q = q.T
    return gain * q  # shape (out_dim, in_dim)


def make_params(key, input_dim, output_dim, hidden_dims=(32, 32)):
    k0, k1, k2 = jax.random.split(key, 3)
    # PyTorch Linear weight is (out, in); kernel wants (in, out) -> transpose.
    w0 = orthogonal_weight(k0, hidden_dims[0], input_dim, gain=1.0).T
    b0 = jnp.zeros((1, hidden_dims[0]), jnp.float32)
    w1 = orthogonal_weight(k1, hidden_dims[1], hidden_dims[0], gain=1.0).T
    b1 = jnp.zeros((1, hidden_dims[1]), jnp.float32)
    w2 = orthogonal_weight(k2, output_dim, hidden_dims[1], gain=0.001).T
    b2 = jnp.zeros((1, output_dim), jnp.float32)
    return w0, b0, w1, b1, w2, b2


# --------------------------------------------------------------------------
# Pure-JAX references for correctness checks
# --------------------------------------------------------------------------
def fcca_ref_mixed(x, w0, b0, w1, b1, w2, b2):
    """Mirrors the kernel's bf16-operand / f32-accumulate arithmetic."""
    if x.ndim == 1:
        x = x[None, :]
    cd = COMPUTE_DTYPE
    h = jnp.dot(x.astype(cd), w0.astype(cd), preferred_element_type=jnp.float32) + b0
    h = jnp.maximum(h, 0.0).astype(cd)
    h = jnp.dot(h, w1.astype(cd), preferred_element_type=jnp.float32) + b1
    h = jnp.maximum(h, 0.0).astype(cd)
    return jnp.dot(h, w2.astype(cd), preferred_element_type=jnp.float32) + b2


def fcca_ref_f32(x, w0, b0, w1, b1, w2, b2):
    if x.ndim == 1:
        x = x[None, :]
    h = jnp.maximum(x @ w0 + b0, 0.0)
    h = jnp.maximum(h @ w1 + b1, 0.0)
    return h @ w2 + b2


if __name__ == "__main__":
    key = jax.random.PRNGKey(0)
    k_params, k_x = jax.random.split(key)

    input_dim, output_dim = 16, 4
    batch = 8

    params = make_params(k_params, input_dim, output_dim, hidden_dims=(32, 32))
    x = jax.random.normal(k_x, (batch, input_dim), dtype=jnp.float32)

    # Batched forward
    out = fcca_forward(x, *params)
    out = jax.block_until_ready(out)
    assert out.shape == (batch, output_dim)

    # Tight check against a reference that mirrors the kernel's dtype choices.
    ref_mixed = fcca_ref_mixed(x, *params)
    assert jnp.allclose(out, ref_mixed, atol=1e-4, rtol=1e-4), "mismatch vs mixed-precision reference"

    # Loose sanity check against the pure-f32 PyTorch-equivalent math.
    ref_f32 = fcca_ref_f32(x, *params)
    assert jnp.allclose(out, ref_f32, atol=1e-2, rtol=5e-2), "mismatch vs f32 reference"

    # Single-state path (_format promotes a 1-D state vector to a batch of one).
    single = fcca_forward(x[0], *params)
    single = jax.block_until_ready(single)
    assert single.shape == (1, output_dim)
    assert jnp.allclose(single, out[:1], atol=1e-4, rtol=1e-4)

    print("KERNEL_OK")
</pallas_src>

<mosaic_0001>
module attributes {stable_mosaic.version = 11 : i64} {
  func.func @fcca_kernel(%arg0: i32, %arg1: memref<8x16xf32, #tpu.memory_space<vmem>>, %arg2: memref<16x32xf32, #tpu.memory_space<vmem>>, %arg3: memref<1x32xf32, #tpu.memory_space<vmem>>, %arg4: memref<32x32xf32, #tpu.memory_space<vmem>>, %arg5: memref<1x32xf32, #tpu.memory_space<vmem>>, %arg6: memref<32x4xf32, #tpu.memory_space<vmem>>, %arg7: memref<1x4xf32, #tpu.memory_space<vmem>>, %arg8: memref<8x4xf32, #tpu.memory_space<vmem>>) attributes {dimension_semantics = [#tpu.dimension_semantics<parallel>], iteration_bounds = array<i64: 1>, scalar_prefetch = 0 : i64, scratch_operands = 0 : i64, tpu.core_type = #tpu.core_type<tc>, window_params = [{transform_indices = @transform_0, window_bounds = array<i64: 8, 16>}, {pipeline_mode = #tpu.pipeline_mode<synchronous>, transform_indices = @transform_1, window_bounds = array<i64: 16, 32>}, {pipeline_mode = #tpu.pipeline_mode<synchronous>, transform_indices = @transform_2, window_bounds = array<i64: 1, 32>}, {pipeline_mode = #tpu.pipeline_mode<synchronous>, transform_indices = @transform_3, window_bounds = array<i64: 32, 32>}, {pipeline_mode = #tpu.pipeline_mode<synchronous>, transform_indices = @transform_4, window_bounds = array<i64: 1, 32>}, {pipeline_mode = #tpu.pipeline_mode<synchronous>, transform_indices = @transform_5, window_bounds = array<i64: 32, 4>}, {pipeline_mode = #tpu.pipeline_mode<synchronous>, transform_indices = @transform_6, window_bounds = array<i64: 1, 4>}, {transform_indices = @transform_7, window_bounds = array<i64: 8, 4>}]} {
    %c0 = arith.constant 0 : index
    %c0_0 = arith.constant 0 : index
    %0 = vector.load %arg1[%c0, %c0_0] : memref<8x16xf32, #tpu.memory_space<vmem>>, vector<8x16xf32>
    %1 = arith.truncf %0 : vector<8x16xf32> to vector<8x16xbf16>
    %c0_1 = arith.constant 0 : index
    %c0_2 = arith.constant 0 : index
    %2 = vector.load %arg2[%c0_1, %c0_2] : memref<16x32xf32, #tpu.memory_space<vmem>>, vector<16x32xf32>
    %3 = arith.truncf %2 : vector<16x32xf32> to vector<16x32xbf16>
    %cst = arith.constant dense<0.000000e+00> : vector<8x32xf32>
    %4 = tpu.matmul %1, %3, %cst {dimension_numbers = #tpu.dot_dimension_numbers<[1], [0], [0], [1], [0, 0, 1, 1], [], []>} : vector<8x16xbf16>, vector<16x32xbf16>, vector<8x32xf32> -> vector<8x32xf32>
    %c0_3 = arith.constant 0 : index
    %c0_4 = arith.constant 0 : index
    %5 = vector.load %arg3[%c0_3, %c0_4] : memref<1x32xf32, #tpu.memory_space<vmem>>, vector<1x32xf32>
    %6 = vector.broadcast %5 : vector<1x32xf32> to vector<8x32xf32>
    %7 = arith.addf %4, %6 : vector<8x32xf32>
    %cst_5 = arith.constant 0.000000e+00 : f32
    %8 = vector.broadcast %cst_5 : f32 to vector<8x32xf32>
    %9 = arith.maximumf %7, %8 : vector<8x32xf32>
    %10 = arith.truncf %9 : vector<8x32xf32> to vector<8x32xbf16>
    %c0_6 = arith.constant 0 : index
    %c0_7 = arith.constant 0 : index
    %11 = vector.load %arg4[%c0_6, %c0_7] : memref<32x32xf32, #tpu.memory_space<vmem>>, vector<32x32xf32>
    %12 = arith.truncf %11 : vector<32x32xf32> to vector<32x32xbf16>
    %cst_8 = arith.constant dense<0.000000e+00> : vector<8x32xf32>
    %13 = tpu.matmul %10, %12, %cst_8 {dimension_numbers = #tpu.dot_dimension_numbers<[1], [0], [0], [1], [0, 0, 1, 1], [], []>} : vector<8x32xbf16>, vector<32x32xbf16>, vector<8x32xf32> -> vector<8x32xf32>
    %c0_9 = arith.constant 0 : index
    %c0_10 = arith.constant 0 : index
    %14 = vector.load %arg5[%c0_9, %c0_10] : memref<1x32xf32, #tpu.memory_space<vmem>>, vector<1x32xf32>
    %15 = vector.broadcast %14 : vector<1x32xf32> to vector<8x32xf32>
    %16 = arith.addf %13, %15 : vector<8x32xf32>
    %cst_11 = arith.constant 0.000000e+00 : f32
    %17 = vector.broadcast %cst_11 : f32 to vector<8x32xf32>
    %18 = arith.maximumf %16, %17 : vector<8x32xf32>
    %19 = arith.truncf %18 : vector<8x32xf32> to vector<8x32xbf16>
    %c0_12 = arith.constant 0 : index
    %c0_13 = arith.constant 0 : index
    %20 = vector.load %arg6[%c0_12, %c0_13] : memref<32x4xf32, #tpu.memory_space<vmem>>, vector<32x4xf32>
    %21 = arith.truncf %20 : vector<32x4xf32> to vector<32x4xbf16>
    %cst_14 = arith.constant dense<0.000000e+00> : vector<8x4xf32>
    %22 = tpu.matmul %19, %21, %cst_14 {dimension_numbers = #tpu.dot_dimension_numbers<[1], [0], [0], [1], [0, 0, 1, 1], [], []>} : vector<8x32xbf16>, vector<32x4xbf16>, vector<8x4xf32> -> vector<8x4xf32>
    %c0_15 = arith.constant 0 : index
    %c0_16 = arith.constant 0 : index
    %23 = vector.load %arg7[%c0_15, %c0_16] : memref<1x4xf32, #tpu.memory_space<vmem>>, vector<1x4xf32>
    %24 = vector.broadcast %23 : vector<1x4xf32> to vector<8x4xf32>
    %25 = arith.addf %22, %24 : vector<8x4xf32>
    %c0_17 = arith.constant 0 : index
    %c0_18 = arith.constant 0 : index
    %26 = vector.load %arg8[%c0_17, %c0_18] : memref<8x4xf32, #tpu.memory_space<vmem>>, vector<8x4xf32>
    tpu.vector_store %arg8[%c0_17, %c0_18], %25 {strides = array<i32>} : memref<8x4xf32, #tpu.memory_space<vmem>>, vector<8x4xf32>,
    return
  }
  func.func @transform_0(%arg0: i32) -> (i32, i32) {
    %c0_i32 = arith.constant 0 : i32
    %c0_i32_0 = arith.constant 0 : i32
    return %arg0, %c0_i32 : i32, i32
  }
  func.func @transform_1(%arg0: i32) -> (i32, i32) {
    %c0_i32 = arith.constant 0 : i32
    %c0_i32_0 = arith.constant 0 : i32
    %c0_i32_1 = arith.constant 0 : i32
    return %c0_i32, %c0_i32_0 : i32, i32
  }
  func.func @transform_2(%arg0: i32) -> (i32, i32) {
    %c0_i32 = arith.constant 0 : i32
    %c0_i32_0 = arith.constant 0 : i32
    %c0_i32_1 = arith.constant 0 : i32
    return %c0_i32, %c0_i32_0 : i32, i32
  }
  func.func @transform_3(%arg0: i32) -> (i32, i32) {
    %c0_i32 = arith.constant 0 : i32
    %c0_i32_0 = arith.constant 0 : i32
    %c0_i32_1 = arith.constant 0 : i32
    return %c0_i32, %c0_i32_0 : i32, i32
  }
  func.func @transform_4(%arg0: i32) -> (i32, i32) {
    %c0_i32 = arith.constant 0 : i32
    %c0_i32_0 = arith.constant 0 : i32
    %c0_i32_1 = arith.constant 0 : i32
    return %c0_i32, %c0_i32_0 : i32, i32
  }
  func.func @transform_5(%arg0: i32) -> (i32, i32) {
    %c0_i32 = arith.constant 0 : i32
    %c0_i32_0 = arith.constant 0 : i32
    %c0_i32_1 = arith.constant 0 : i32
    return %c0_i32, %c0_i32_0 : i32, i32
  }
  func.func @transform_6(%arg0: i32) -> (i32, i32) {
    %c0_i32 = arith.constant 0 : i32
    %c0_i32_0 = arith.constant 0 : i32
    %c0_i32_1 = arith.constant 0 : i32
    return %c0_i32, %c0_i32_0 : i32, i32
  }
  func.func @transform_7(%arg0: i32) -> (i32, i32) {
    %c0_i32 = arith.constant 0 : i32
    %c0_i32_0 = arith.constant 0 : i32
    return %arg0, %c0_i32 : i32, i32
  }
}

</mosaic_0001>

<bundles_post_ra>
// kernel: fcca_forward.1
= control target key start
LH: loop header
LB: loop body
LE: loop exit
PB: predicated region body
PF: predicated region fallthrough
CT: control target
= control target key end

     0   :  { %12 = vsyncpa [#allocation3], 0  ;;  %s286_s24 = smov [#allocation2]   ;;  %s382_s0 = inlined_call_operand.vmem [shape: f32[8,16], index: 0, kind: input, shape index: {}]   ;;  %s383_s1 = inlined_call_operand.hbm [shape: f32[16,32], index: 1, kind: input, shape index: {}]   ;;  %s384_s2 = inlined_call_operand.vmem [shape: f32[1,32], index: 2, kind: input, shape index: {}]   ;;  %s385_s3 = inlined_call_operand.vmem [shape: f32[32,32], index: 3, kind: input, shape index: {}]   ;;  %s386_s4 = inlined_call_operand.vmem [shape: f32[1,32], index: 4, kind: input, shape index: {}]   ;;  %s387_s5 = inlined_call_operand.vmem [shape: f32[32,4], index: 5, kind: input, shape index: {}]   ;;  %s388_s6 = inlined_call_operand.vmem [shape: f32[1,4], index: 6, kind: input, shape index: {}]   ;;  %s389_s7 = inlined_call_operand.vmem [shape: f32[8,4], index: 7, kind: output, shape index: {}]  }
   0x1   :  { %s20_s25 = sshll.u32 %s286_s24, 4  ;;  %s262_s28 = scalar_lea.hbm %s383_s1, 256  ;;  %s21_s25 = int_to_ptr.vmem [resolvable:$true] %s20_s25 }
   0x2   :  { %p263_p0 = scmp.ne.s32.totalorder %s383_s1, %s262_s28  ;;  %p266_p1 = scmp.lt.u32.totalorder %s262_s28, %s383_s1 }
   0x4   :  { %p268_p2 = pnand %p266_p1, %p263_p0 }
   0x6   :  { %271 = shalt.err (!%p268_p2)
}
   0x7   :  { %s272_s10 = scalar_lea.vmem %s21_s25, 256  ;;  %p277_p4 = scmp.lt.s32.totalorder %s21_s25, %s21_s25 }
   0x8   :  { %p273_p3 = scmp.ne.s32.totalorder %s21_s25, %s272_s10  ;;  %p278_p5 = scmp.lt.s32.totalorder %s272_s10, %s272_s10 }
   0xa   :  { %p279_p6 = por %p278_p5, %p277_p4 }
   0xc   :  { %p280_p7 = pnand %p279_p6, %p273_p3 }
   0xe   :  { %283 = shalt.err (!%p280_p7)
}
   0xf   :  { %s287_s11 = smov 128   ;;  %s288_s12 = smov 8  }
  0x10   :  { %26 = dma.hbm_to_vmem [thread:$0]  %s383_s1, 256, %s21_s25, [#allocation3], %s287_s11, %s287_s11, %s288_s12  }
  0x11   :  { %284 = dma.done.wait [#allocation3], 256  }
  0x12   :  { %285 = vsyncadd [#allocation3], 4294967040  ;;  %v289_v0 = vmov 0.0   ;;  %vm290_vm0 = vmmov 0   ;;  %v43_v1 = vld [vmem:[#allocation2] sm:$0xff]  ;;  %v44_v2 = vld [vmem:[#allocation2 + $0x8] sm:$0xff] }
  0x13   :  { %235 = vmatprep.subr.bf16.mxu0 %v289_v0  ;;  %237 = vmatprep.mubr.msk.bf16.mxu0 %vm290_vm0, %v289_v0  ;;  %v41_v3 = vld [vmem:[%s382_s0] sm:$0xff]  ;;  %v45_v4 = vpack.c.bf16 %v44_v2, %v43_v1  ;;  %vm53_vm1 = vcmask 130048   ;;  %v100_v7 = vld [vmem:[%s385_s3 + $0x8] sm:$0xff]  ;;  %v101_v9 = vld [vmem:[%s385_s3 + $0x10] sm:$0xff]  ;;  %vm112_vm2 = vcmask 261120   ;;  %vm214_vm3 = vcmask 31744  }
  0x14   :  { %241 = vmatprep.subr.bf16.mxu1 %v289_v0  ;;  %245 = vmatprep.mubr.msk.bf16.mxu1 %vm290_vm0, %v289_v0  ;;  %v42_v5 = vpack.c.bf16 %v41_v3, %v41_v3  ;;  %v99_v6 = vld [vmem:[%s385_s3] sm:$0xff]  ;;  %v102_v10 = vld [vmem:[%s385_s3 + $0x18] sm:$0xff]  ;;  %v159_v13 = vld [vmem:[%s387_s5 + $0x8] sm:$0xff] }
  0x15   :  { %236 = vmatpush3.bf16.msra.mxu0 %v45_v4  ;;  %v103_v8 = vpack.c.bf16 %v100_v7, %v99_v6  ;;  %v104_v11 = vpack.c.bf16 %v102_v10, %v101_v9  ;;  %v158_v12 = vld [vmem:[%s387_s5] sm:$0xff]  ;;  %v160_v23 = vld [vmem:[%s387_s5 + $0x10] sm:$0xff]  ;;  %v161_v24 = vld [vmem:[%s387_s5 + $0x18] sm:$0xff] }
  0x16   :  { %249 = vmatprep.subr.bf16.mxu0 %v289_v0  ;;  %v162_v14 = vpack.c.bf16 %v159_v13, %v158_v12  ;;  %v221_v15 = vld [vmem:[%s384_s2] ss:$0 sm:$0xff]  ;;  %v163_v25 = vpack.c.bf16 %v161_v24, %v160_v23 }
  0x17   :  { %242 = vmatpush3.bf16.msra.mxu1 %v103_v8  ;;  %v223_v26 = vld [vmem:[%s386_s4] ss:$0 sm:$0xff] }
  0x18   :  { %238 = vmatmul.mubr.msk.bf16.vlgmr.msra.gmra.mrb[0].mxu0 %vm53_vm1, %v42_v5  ;;  %243 = vmatprep.subr.bf16.mxu1 %v289_v0  ;;  %v225_v34 = vld [vmem:[%s388_s6] ss:$0 sm:$0xff] }
  0x19   :  { %253 = vmatprep.mubr.msk.bf16.mxu0 %vm290_vm0, %v289_v0  ;;  %250 = vmatpush3.bf16.msra.mxu0 %v162_v14 }
  0x1a   :  { %251 = vmatprep.subr.bf16.mxu0 %v289_v0 }
  0x1b   :  { %244 = vmatpush3.bf16.msra.mxu1 %v104_v11 }
  0x1d   :  { %252 = vmatpush3.bf16.msra.mxu0 %v163_v25 }
  0xeb   :  { %v91_v16 = vpop.f32.mrb[0].mxu0 }
  0xec   :  { %v92_v17 = vadd.f32 %v221_v15, %v91_v16  ;;  %v239_v18 = vpop.f32.mrb[1].mxu0 }
  0xed   :  { %v94_v19 = vpop.f32.mrb[2].mxu0 }
  0xee   :  { %v97_v20 = vmax.f32 %v92_v17, 0.0  ;;  %v240_v21 = vpop.f32.mrb[3].mxu0 }
  0xf0   :  { %v98_v22 = vpack.c.bf16 %v97_v20, %v97_v20 }
  0xf2   :  { %246 = vmatmul.mubr.msk.bf16.vlgmr.msra.gmra.mrb[0].mxu1 %vm112_vm2, %v98_v22 }
 0x1c5   :  { %v150_v27 = vpop.f32.mrb[0].mxu1 }
 0x1c6   :  { %v151_v28 = vadd.f32 %v223_v26, %v150_v27  ;;  %v247_v29 = vpop.f32.mrb[1].mxu1 }
 0x1c7   :  { %v153_v30 = vpop.f32.mrb[2].mxu1 }
 0x1c8   :  { %v156_v31 = vmax.f32 %v151_v28, 0.0  ;;  %v248_v32 = vpop.f32.mrb[3].mxu1 }
 0x1ca   :  { %v157_v33 = vpack.c.bf16 %v156_v31, %v156_v31 }
 0x1cc   :  { %254 = vmatmul.mubr.msk.bf16.vlgmr.msra.gmra.mrb[4].mxu0 %vm112_vm2, %v157_v33 }
 0x29f   :  { %v208_v35 = vpop.f32.mrb[4].mxu0 }
 0x2a0   :  { %v209_v36 = vadd.f32 %v225_v34, %v208_v35  ;;  %v255_v37 = vpop.f32.mrb[5].mxu0 }
 0x2a1   :  { %v211_v38 = vpop.f32.mrb[6].mxu0 }
 0x2a2   :  { %215 = vst.msk [vmem:[%s389_s7] sm:$0xff] %vm214_vm3, %v209_v36  ;;  %v256_v39 = vpop.f32.mrb[7].mxu0 }
 0x2a3   :  { %220 = vsyncpa [#allocation3], 1 }

</bundles_post_ra>
